<compile_context>
chip_gen: v7x
topology: tpu7x:2x2x1
jax: 0.10.0
libtpu: 0.0.40
codegen_flags: <defaults>
</compile_context>

<pallas_src>
import functools

import jax
import jax.numpy as jnp
from jax.experimental import pallas as pl
from jax.experimental.pallas import tpu as pltpu

# ----------------------------- config ---------------------------------------
REP_DIM = 64       # representation_dim
NUM_VIEWS = 4
NUM_QUERIES = 8
NUM_HEADS = 4
FFN_DIM = 128
LN_EPS = 1e-5

# f32 parameter-slab row indices (one DMA for all small vectors).
(ROW_VTOK, ROW_QTOK, ROW_BQKV, ROW_BO, ROW_LN1G, ROW_LN1B,
 ROW_B1, ROW_B2, ROW_LN2G, ROW_LN2B) = range(10)
PSLAB_ROWS = 16            # padded to a sublane-8 multiple


def _vmem_specs(n):
    return [pl.BlockSpec(memory_space=pltpu.MemorySpace.VMEM) for _ in range(n)]


def _layernorm(x, g, b):
    mu = jnp.mean(x, axis=-1, keepdims=True)
    var = jnp.mean((x - mu) ** 2, axis=-1, keepdims=True)
    return (x - mu) * jax.lax.rsqrt(var + LN_EPS) * g + b


# ------------------- fused kernel: build input + encoder layer ---------------
def scene_kernel(feats_ref, wslab_ref, pslab_ref, out_ref,
                 *, num_heads, num_views, num_queries, rep_dim, ffn_dim):
    D, F = rep_dim, ffn_dim
    V, Q = num_views, num_queries
    hd = D // num_heads

    # ---- build scene_tf_input entirely in vregs (no scratch roundtrip) ------
    view_tok = pslab_ref[ROW_VTOK:ROW_VTOK + 1, 0:D]          # [1, D]
    query_tok = pslab_ref[ROW_QTOK:ROW_QTOK + 1, 0:D]         # [1, D]
    views = (view_tok + feats_ref[0:V, :] + feats_ref[V:2 * V, :]
             + feats_ref[2 * V:3 * V, :])                     # [V, D]
    queries = query_tok + feats_ref[3 * V:3 * V + Q, :]       # [Q, D]
    x = jnp.concatenate([views, queries], axis=0)             # [S, D] f32

    # ---- fused QKV projection (bf16 MXU operands, f32 accumulation) ---------
    xb = x.astype(jnp.bfloat16)
    qkv = jnp.dot(xb, wslab_ref[0:D, 0:3 * D],
                  preferred_element_type=jnp.float32)          # [S, 3D]
    qkv = qkv + pslab_ref[ROW_BQKV:ROW_BQKV + 1, 0:3 * D]

    # ---- multi-head attention; heads concatenated -> ONE output projection --
    heads = []
    for h in range(num_heads):                                 # static unrolled
        lo = h * hd
        qh = qkv[:, lo:lo + hd]
        kh = qkv[:, D + lo:D + lo + hd]
        vh = qkv[:, 2 * D + lo:2 * D + lo + hd]
        # scores: 1/sqrt(hd) is folded into the Q block of wqkv at init time
        s = jnp.dot(qh.astype(jnp.bfloat16), kh.astype(jnp.bfloat16).T,
                    preferred_element_type=jnp.float32)        # [S, S]
        s = s - jnp.max(s, axis=-1, keepdims=True)             # f32 softmax
        p = jnp.exp(s)
        l = jnp.sum(p, axis=-1, keepdims=True)
        oh = jnp.dot(p.astype(jnp.bfloat16), vh.astype(jnp.bfloat16),
                     preferred_element_type=jnp.float32)       # [S, hd]
        heads.append(oh * pl.reciprocal(l, approx=True))       # post-matmul norm
    o = jnp.concatenate(heads, axis=-1)                        # [S, D]
    attn = jnp.dot(o.astype(jnp.bfloat16), wslab_ref[D:2 * D, 0:D],
                   preferred_element_type=jnp.float32)
    attn = attn + pslab_ref[ROW_BO:ROW_BO + 1, 0:D]

    # ---- residual + LN1 (f32) ------------------------------------------------
    h1 = _layernorm(x + attn,
                    pslab_ref[ROW_LN1G:ROW_LN1G + 1, 0:D],
                    pslab_ref[ROW_LN1B:ROW_LN1B + 1, 0:D])

    # ---- feed-forward (bf16 matmuls, f32 elementwise) ------------------------
    f = jnp.dot(h1.astype(jnp.bfloat16), wslab_ref[2 * D:3 * D, 0:F],
                preferred_element_type=jnp.float32)
    f = f + pslab_ref[ROW_B1:ROW_B1 + 1, 0:F]
    # TODO(synk): PyTorch nn.GELU default is the exact erf form; tanh approx used here.
    f = jax.nn.gelu(f, approximate=True)
    f = jnp.dot(f.astype(jnp.bfloat16), wslab_ref[3 * D:3 * D + F, 0:D],
                preferred_element_type=jnp.float32)
    f = f + pslab_ref[ROW_B2:ROW_B2 + 1, 0:D]

    # ---- residual + LN2; single lane-contiguous writeback --------------------
    y = _layernorm(h1 + f,
                   pslab_ref[ROW_LN2G:ROW_LN2G + 1, 0:D],
                   pslab_ref[ROW_LN2B:ROW_LN2B + 1, 0:D])
    out_ref[...] = y.astype(out_ref.dtype)


# ----------------------------- parameters ------------------------------------
def init_params(key, rep_dim=REP_DIM, ffn_dim=FFN_DIM, num_heads=NUM_HEADS):
    assert rep_dim % num_heads == 0
    assert ffn_dim <= 3 * rep_dim           # F must fit the slab lane width
    ks = jax.random.split(key, 8)
    std = 0.02
    D, F = rep_dim, ffn_dim
    hd = D // num_heads
    scale = 1.0 / float(hd) ** 0.5

    view_token = jax.random.normal(ks[0], (D,), jnp.float32)
    query_token = jax.random.normal(ks[1], (D,), jnp.float32)
    wq = jax.random.normal(ks[2], (D, D), jnp.float32) * std
    wk = jax.random.normal(ks[3], (D, D), jnp.float32) * std
    wv = jax.random.normal(ks[4], (D, D), jnp.float32) * std
    # Fuse QKV into one lane-dense [D, 3D] weight; fold 1/sqrt(hd) into Q block.
    wqkv = jnp.concatenate([wq * scale, wk, wv], axis=1)
    wo = jax.random.normal(ks[5], (D, D), jnp.float32) * std
    w1 = jax.random.normal(ks[6], (D, F), jnp.float32) * std
    w2 = jax.random.normal(ks[7], (F, D), jnp.float32) * std

    # --- bf16 weight slab: one DMA for all four matmul weights ----------------
    # rows [0:D)        = wqkv  (cols 0:3D)
    # rows [D:2D)       = wo    (cols 0:D)
    # rows [2D:3D)      = w1    (cols 0:F)
    # rows [3D:3D+F)    = w2    (cols 0:D)
    wslab = jnp.zeros((3 * D + F, 3 * D), jnp.bfloat16)
    wslab = wslab.at[0:D, 0:3 * D].set(wqkv.astype(jnp.bfloat16))
    wslab = wslab.at[D:2 * D, 0:D].set(wo.astype(jnp.bfloat16))
    wslab = wslab.at[2 * D:3 * D, 0:F].set(w1.astype(jnp.bfloat16))
    wslab = wslab.at[3 * D:3 * D + F, 0:D].set(w2.astype(jnp.bfloat16))

    # --- f32 parameter slab: tokens / biases / LN params in one DMA -----------
    pslab = jnp.zeros((PSLAB_ROWS, 3 * D), jnp.float32)
    pslab = pslab.at[ROW_VTOK, 0:D].set(view_token)
    pslab = pslab.at[ROW_QTOK, 0:D].set(query_token)
    # biases (bqkv, bo, b1, b2) and LN betas stay zero-initialized
    pslab = pslab.at[ROW_LN1G, 0:D].set(1.0)
    pslab = pslab.at[ROW_LN2G, 0:D].set(1.0)

    return {"wslab": wslab, "pslab": pslab}


# ----------------------------- wrapper ---------------------------------------
@jax.jit
def scene_transformer_forward(params, encoded_views, encoded_view_xyz,
                              encoded_view_quat, encoded_query_xyz):
    V, D = encoded_views.shape
    Q = encoded_query_xyz.shape[0]
    S = V + Q

    # One stacked [3V+Q, D] feature input -> one DMA instead of four.
    feats = jnp.concatenate([encoded_views, encoded_view_xyz,
                             encoded_view_quat, encoded_query_xyz], axis=0)

    kernel = functools.partial(scene_kernel, num_heads=NUM_HEADS,
                               num_views=V, num_queries=Q,
                               rep_dim=D, ffn_dim=FFN_DIM)
    y = pl.pallas_call(
        kernel,
        out_shape=jax.ShapeDtypeStruct((S, D), jnp.float32),
        in_specs=_vmem_specs(3),
        out_specs=pl.BlockSpec(memory_space=pltpu.MemorySpace.VMEM),
    )(feats, params["wslab"], params["pslab"])

    # unsqueeze(0) + row split in the wrapper (free on a 3 KiB tensor) —
    # matches the PyTorch return (out[:, :V, ...], out[:, V:, ...]).
    return y[None, :V], y[None, V:]


# ----------------------------- main -------------------------------------------
if __name__ == "__main__":
    key = jax.random.PRNGKey(0)
    k_par, k_v, k_vx, k_vq, k_qx = jax.random.split(key, 5)

    params = init_params(k_par)

    # Pre-encoded features (outputs of the externally-registered encoders).
    encoded_views      = jax.random.normal(k_v,  (NUM_VIEWS,   REP_DIM), jnp.float32)
    encoded_view_xyz   = jax.random.normal(k_vx, (NUM_VIEWS,   REP_DIM), jnp.float32)
    encoded_view_quat  = jax.random.normal(k_vq, (NUM_VIEWS,   REP_DIM), jnp.float32)
    encoded_query_xyz  = jax.random.normal(k_qx, (NUM_QUERIES, REP_DIM), jnp.float32)

    view_out, query_out = scene_transformer_forward(
        params, encoded_views, encoded_view_xyz, encoded_view_quat, encoded_query_xyz)
    jax.block_until_ready((view_out, query_out))

    assert view_out.shape == (1, NUM_VIEWS, REP_DIM)
    assert query_out.shape == (1, NUM_QUERIES, REP_DIM)
    assert bool(jnp.all(jnp.isfinite(view_out))) and bool(jnp.all(jnp.isfinite(query_out)))
    print("KERNEL_OK")
</pallas_src>

<mosaic_0001>
module attributes {stable_mosaic.version = 11 : i64} {
  func.func @scene_kernel(%arg0: memref<20x64xf32, #tpu.memory_space<vmem>>, %arg1: memref<320x192xbf16, #tpu.memory_space<vmem>>, %arg2: memref<16x192xf32, #tpu.memory_space<vmem>>, %arg3: memref<12x64xf32, #tpu.memory_space<vmem>>) attributes {dimension_semantics = [], scalar_prefetch = 0 : i64, scratch_operands = 0 : i64, tpu.core_type = #tpu.core_type<tc>} {
    %c0 = arith.constant 0 : index
    %c0_0 = arith.constant 0 : index
    %0 = vector.load %arg2[%c0, %c0_0] : memref<16x192xf32, #tpu.memory_space<vmem>>, vector<1x64xf32>
    %c1 = arith.constant 1 : index
    %c0_1 = arith.constant 0 : index
    %1 = vector.load %arg2[%c1, %c0_1] : memref<16x192xf32, #tpu.memory_space<vmem>>, vector<1x64xf32>
    %c0_2 = arith.constant 0 : index
    %c0_3 = arith.constant 0 : index
    %2 = vector.load %arg0[%c0_2, %c0_3] : memref<20x64xf32, #tpu.memory_space<vmem>>, vector<4x64xf32>
    %3 = vector.broadcast %0 : vector<1x64xf32> to vector<4x64xf32>
    %4 = arith.addf %3, %2 : vector<4x64xf32>
    %c4 = arith.constant 4 : index
    %c0_4 = arith.constant 0 : index
    %5 = vector.load %arg0[%c4, %c0_4] : memref<20x64xf32, #tpu.memory_space<vmem>>, vector<4x64xf32>
    %6 = arith.addf %4, %5 : vector<4x64xf32>
    %c8 = arith.constant 8 : index
    %c0_5 = arith.constant 0 : index
    %7 = vector.load %arg0[%c8, %c0_5] : memref<20x64xf32, #tpu.memory_space<vmem>>, vector<4x64xf32>
    %8 = arith.addf %6, %7 : vector<4x64xf32>
    %c12 = arith.constant 12 : index
    %c0_6 = arith.constant 0 : index
    %9 = vector.load %arg0[%c12, %c0_6] : memref<20x64xf32, #tpu.memory_space<vmem>>, vector<8x64xf32>
    %10 = vector.broadcast %1 : vector<1x64xf32> to vector<8x64xf32>
    %11 = arith.addf %10, %9 : vector<8x64xf32>
    %12 = tpu.concatenate %8, %11 in 0 : vector<4x64xf32>, vector<8x64xf32> -> vector<12x64xf32>
    %13 = arith.truncf %12 : vector<12x64xf32> to vector<12x64xbf16>
    %c0_7 = arith.constant 0 : index
    %c0_8 = arith.constant 0 : index
    %14 = vector.load %arg1[%c0_7, %c0_8] : memref<320x192xbf16, #tpu.memory_space<vmem>>, vector<64x192xbf16>
    %cst = arith.constant dense<0.000000e+00> : vector<12x192xf32>
    %15 = tpu.matmul %13, %14, %cst {dimension_numbers = #tpu.dot_dimension_numbers<[1], [0], [0], [1], [0, 0, 1, 1], [], []>} : vector<12x64xbf16>, vector<64x192xbf16>, vector<12x192xf32> -> vector<12x192xf32>
    %c2 = arith.constant 2 : index
    %c0_9 = arith.constant 0 : index
    %16 = vector.load %arg2[%c2, %c0_9] : memref<16x192xf32, #tpu.memory_space<vmem>>, vector<1x192xf32>
    %17 = vector.broadcast %16 : vector<1x192xf32> to vector<12x192xf32>
    %18 = arith.addf %15, %17 : vector<12x192xf32>
    %19 = vector.extract_strided_slice %18 {offsets = [0, 0], sizes = [12, 16], strides = [1, 1]} : vector<12x192xf32> to vector<12x16xf32>
    %20 = vector.extract_strided_slice %18 {offsets = [0, 64], sizes = [12, 16], strides = [1, 1]} : vector<12x192xf32> to vector<12x16xf32>
    %21 = vector.extract_strided_slice %18 {offsets = [0, 128], sizes = [12, 16], strides = [1, 1]} : vector<12x192xf32> to vector<12x16xf32>
    %22 = arith.truncf %19 : vector<12x16xf32> to vector<12x16xbf16>
    %23 = arith.truncf %20 : vector<12x16xf32> to vector<12x16xbf16>
    %24 = tpu.transpose %23, [1, 0] : vector<12x16xbf16> -> vector<16x12xbf16>
    %cst_10 = arith.constant dense<0.000000e+00> : vector<12x12xf32>
    %25 = tpu.matmul %22, %24, %cst_10 {dimension_numbers = #tpu.dot_dimension_numbers<[1], [0], [0], [1], [0, 0, 1, 1], [], []>} : vector<12x16xbf16>, vector<16x12xbf16>, vector<12x12xf32> -> vector<12x12xf32>
    %cst_11 = arith.constant dense<0xFF800000> : vector<12xf32>
    %26 = vector.multi_reduction <maximumf>, %25, %cst_11 [1] : vector<12x12xf32> to vector<12xf32>
    %27 = vector.shape_cast %26 : vector<12xf32> to vector<12x1xf32>
    %28 = vector.broadcast %27 : vector<12x1xf32> to vector<12x12xf32>
    %29 = arith.subf %25, %28 : vector<12x12xf32>
    %30 = math.exp %29 : vector<12x12xf32>
    %cst_12 = arith.constant dense<0.000000e+00> : vector<12xf32>
    %31 = vector.multi_reduction <add>, %30, %cst_12 [1] : vector<12x12xf32> to vector<12xf32>
    %32 = vector.shape_cast %31 : vector<12xf32> to vector<12x1xf32>
    %33 = arith.truncf %30 : vector<12x12xf32> to vector<12x12xbf16>
    %34 = arith.truncf %21 : vector<12x16xf32> to vector<12x16xbf16>
    %cst_13 = arith.constant dense<0.000000e+00> : vector<12x16xf32>
    %35 = tpu.matmul %33, %34, %cst_13 {dimension_numbers = #tpu.dot_dimension_numbers<[1], [0], [0], [1], [0, 0, 1, 1], [], []>} : vector<12x12xbf16>, vector<12x16xbf16>, vector<12x16xf32> -> vector<12x16xf32>
    %36 = tpu.reciprocal %32 {approx = true} : vector<12x1xf32> -> vector<12x1xf32>
    %37 = vector.broadcast %36 : vector<12x1xf32> to vector<12x16xf32>
    %38 = arith.mulf %35, %37 : vector<12x16xf32>
    %39 = vector.extract_strided_slice %18 {offsets = [0, 16], sizes = [12, 16], strides = [1, 1]} : vector<12x192xf32> to vector<12x16xf32>
    %40 = vector.extract_strided_slice %18 {offsets = [0, 80], sizes = [12, 16], strides = [1, 1]} : vector<12x192xf32> to vector<12x16xf32>
    %41 = vector.extract_strided_slice %18 {offsets = [0, 144], sizes = [12, 16], strides = [1, 1]} : vector<12x192xf32> to vector<12x16xf32>
    %42 = arith.truncf %39 : vector<12x16xf32> to vector<12x16xbf16>
    %43 = arith.truncf %40 : vector<12x16xf32> to vector<12x16xbf16>
    %44 = tpu.transpose %43, [1, 0] : vector<12x16xbf16> -> vector<16x12xbf16>
    %cst_14 = arith.constant dense<0.000000e+00> : vector<12x12xf32>
    %45 = tpu.matmul %42, %44, %cst_14 {dimension_numbers = #tpu.dot_dimension_numbers<[1], [0], [0], [1], [0, 0, 1, 1], [], []>} : vector<12x16xbf16>, vector<16x12xbf16>, vector<12x12xf32> -> vector<12x12xf32>
    %cst_15 = arith.constant dense<0xFF800000> : vector<12xf32>
    %46 = vector.multi_reduction <maximumf>, %45, %cst_15 [1] : vector<12x12xf32> to vector<12xf32>
    %47 = vector.shape_cast %46 : vector<12xf32> to vector<12x1xf32>
    %48 = vector.broadcast %47 : vector<12x1xf32> to vector<12x12xf32>
    %49 = arith.subf %45, %48 : vector<12x12xf32>
    %50 = math.exp %49 : vector<12x12xf32>
    %cst_16 = arith.constant dense<0.000000e+00> : vector<12xf32>
    %51 = vector.multi_reduction <add>, %50, %cst_16 [1] : vector<12x12xf32> to vector<12xf32>
    %52 = vector.shape_cast %51 : vector<12xf32> to vector<12x1xf32>
    %53 = arith.truncf %50 : vector<12x12xf32> to vector<12x12xbf16>
    %54 = arith.truncf %41 : vector<12x16xf32> to vector<12x16xbf16>
    %cst_17 = arith.constant dense<0.000000e+00> : vector<12x16xf32>
    %55 = tpu.matmul %53, %54, %cst_17 {dimension_numbers = #tpu.dot_dimension_numbers<[1], [0], [0], [1], [0, 0, 1, 1], [], []>} : vector<12x12xbf16>, vector<12x16xbf16>, vector<12x16xf32> -> vector<12x16xf32>
    %56 = tpu.reciprocal %52 {approx = true} : vector<12x1xf32> -> vector<12x1xf32>
    %57 = vector.broadcast %56 : vector<12x1xf32> to vector<12x16xf32>
    %58 = arith.mulf %55, %57 : vector<12x16xf32>
    %59 = vector.extract_strided_slice %18 {offsets = [0, 32], sizes = [12, 16], strides = [1, 1]} : vector<12x192xf32> to vector<12x16xf32>
    %60 = vector.extract_strided_slice %18 {offsets = [0, 96], sizes = [12, 16], strides = [1, 1]} : vector<12x192xf32> to vector<12x16xf32>
    %61 = vector.extract_strided_slice %18 {offsets = [0, 160], sizes = [12, 16], strides = [1, 1]} : vector<12x192xf32> to vector<12x16xf32>
    %62 = arith.truncf %59 : vector<12x16xf32> to vector<12x16xbf16>
    %63 = arith.truncf %60 : vector<12x16xf32> to vector<12x16xbf16>
    %64 = tpu.transpose %63, [1, 0] : vector<12x16xbf16> -> vector<16x12xbf16>
    %cst_18 = arith.constant dense<0.000000e+00> : vector<12x12xf32>
    %65 = tpu.matmul %62, %64, %cst_18 {dimension_numbers = #tpu.dot_dimension_numbers<[1], [0], [0], [1], [0, 0, 1, 1], [], []>} : vector<12x16xbf16>, vector<16x12xbf16>, vector<12x12xf32> -> vector<12x12xf32>
    %cst_19 = arith.constant dense<0xFF800000> : vector<12xf32>
    %66 = vector.multi_reduction <maximumf>, %65, %cst_19 [1] : vector<12x12xf32> to vector<12xf32>
    %67 = vector.shape_cast %66 : vector<12xf32> to vector<12x1xf32>
    %68 = vector.broadcast %67 : vector<12x1xf32> to vector<12x12xf32>
    %69 = arith.subf %65, %68 : vector<12x12xf32>
    %70 = math.exp %69 : vector<12x12xf32>
    %cst_20 = arith.constant dense<0.000000e+00> : vector<12xf32>
    %71 = vector.multi_reduction <add>, %70, %cst_20 [1] : vector<12x12xf32> to vector<12xf32>
    %72 = vector.shape_cast %71 : vector<12xf32> to vector<12x1xf32>
    %73 = arith.truncf %70 : vector<12x12xf32> to vector<12x12xbf16>
    %74 = arith.truncf %61 : vector<12x16xf32> to vector<12x16xbf16>
    %cst_21 = arith.constant dense<0.000000e+00> : vector<12x16xf32>
    %75 = tpu.matmul %73, %74, %cst_21 {dimension_numbers = #tpu.dot_dimension_numbers<[1], [0], [0], [1], [0, 0, 1, 1], [], []>} : vector<12x12xbf16>, vector<12x16xbf16>, vector<12x16xf32> -> vector<12x16xf32>
    %76 = tpu.reciprocal %72 {approx = true} : vector<12x1xf32> -> vector<12x1xf32>
    %77 = vector.broadcast %76 : vector<12x1xf32> to vector<12x16xf32>
    %78 = arith.mulf %75, %77 : vector<12x16xf32>
    %79 = vector.extract_strided_slice %18 {offsets = [0, 48], sizes = [12, 16], strides = [1, 1]} : vector<12x192xf32> to vector<12x16xf32>
    %80 = vector.extract_strided_slice %18 {offsets = [0, 112], sizes = [12, 16], strides = [1, 1]} : vector<12x192xf32> to vector<12x16xf32>
    %81 = vector.extract_strided_slice %18 {offsets = [0, 176], sizes = [12, 16], strides = [1, 1]} : vector<12x192xf32> to vector<12x16xf32>
    %82 = arith.truncf %79 : vector<12x16xf32> to vector<12x16xbf16>
    %83 = arith.truncf %80 : vector<12x16xf32> to vector<12x16xbf16>
    %84 = tpu.transpose %83, [1, 0] : vector<12x16xbf16> -> vector<16x12xbf16>
    %cst_22 = arith.constant dense<0.000000e+00> : vector<12x12xf32>
    %85 = tpu.matmul %82, %84, %cst_22 {dimension_numbers = #tpu.dot_dimension_numbers<[1], [0], [0], [1], [0, 0, 1, 1], [], []>} : vector<12x16xbf16>, vector<16x12xbf16>, vector<12x12xf32> -> vector<12x12xf32>
    %cst_23 = arith.constant dense<0xFF800000> : vector<12xf32>
    %86 = vector.multi_reduction <maximumf>, %85, %cst_23 [1] : vector<12x12xf32> to vector<12xf32>
    %87 = vector.shape_cast %86 : vector<12xf32> to vector<12x1xf32>
    %88 = vector.broadcast %87 : vector<12x1xf32> to vector<12x12xf32>
    %89 = arith.subf %85, %88 : vector<12x12xf32>
    %90 = math.exp %89 : vector<12x12xf32>
    %cst_24 = arith.constant dense<0.000000e+00> : vector<12xf32>
    %91 = vector.multi_reduction <add>, %90, %cst_24 [1] : vector<12x12xf32> to vector<12xf32>
    %92 = vector.shape_cast %91 : vector<12xf32> to vector<12x1xf32>
    %93 = arith.truncf %90 : vector<12x12xf32> to vector<12x12xbf16>
    %94 = arith.truncf %81 : vector<12x16xf32> to vector<12x16xbf16>
    %cst_25 = arith.constant dense<0.000000e+00> : vector<12x16xf32>
    %95 = tpu.matmul %93, %94, %cst_25 {dimension_numbers = #tpu.dot_dimension_numbers<[1], [0], [0], [1], [0, 0, 1, 1], [], []>} : vector<12x12xbf16>, vector<12x16xbf16>, vector<12x16xf32> -> vector<12x16xf32>
    %96 = tpu.reciprocal %92 {approx = true} : vector<12x1xf32> -> vector<12x1xf32>
    %97 = vector.broadcast %96 : vector<12x1xf32> to vector<12x16xf32>
    %98 = arith.mulf %95, %97 : vector<12x16xf32>
    %99 = tpu.concatenate %38, %58, %78, %98 in 1 : vector<12x16xf32>, vector<12x16xf32>, vector<12x16xf32>, vector<12x16xf32> -> vector<12x64xf32>
    %100 = arith.truncf %99 : vector<12x64xf32> to vector<12x64xbf16>
    %c64 = arith.constant 64 : index
    %c0_26 = arith.constant 0 : index
    %101 = vector.load %arg1[%c64, %c0_26] : memref<320x192xbf16, #tpu.memory_space<vmem>>, vector<64x64xbf16>
    %cst_27 = arith.constant dense<0.000000e+00> : vector<12x64xf32>
    %102 = tpu.matmul %100, %101, %cst_27 {dimension_numbers = #tpu.dot_dimension_numbers<[1], [0], [0], [1], [0, 0, 1, 1], [], []>} : vector<12x64xbf16>, vector<64x64xbf16>, vector<12x64xf32> -> vector<12x64xf32>
    %c3 = arith.constant 3 : index
    %c0_28 = arith.constant 0 : index
    %103 = vector.load %arg2[%c3, %c0_28] : memref<16x192xf32, #tpu.memory_space<vmem>>, vector<1x64xf32>
    %104 = vector.broadcast %103 : vector<1x64xf32> to vector<12x64xf32>
    %105 = arith.addf %102, %104 : vector<12x64xf32>
    %106 = arith.addf %12, %105 : vector<12x64xf32>
    %c4_29 = arith.constant 4 : index
    %c0_30 = arith.constant 0 : index
    %107 = vector.load %arg2[%c4_29, %c0_30] : memref<16x192xf32, #tpu.memory_space<vmem>>, vector<1x64xf32>
    %c5 = arith.constant 5 : index
    %c0_31 = arith.constant 0 : index
    %108 = vector.load %arg2[%c5, %c0_31] : memref<16x192xf32, #tpu.memory_space<vmem>>, vector<1x64xf32>
    %cst_32 = arith.constant dense<0.000000e+00> : vector<12xf32>
    %109 = vector.multi_reduction <add>, %106, %cst_32 [1] : vector<12x64xf32> to vector<12xf32>
    %110 = vector.shape_cast %109 : vector<12xf32> to vector<12x1xf32>
    %cst_33 = arith.constant 6.400000e+01 : f32
    %111 = vector.broadcast %cst_33 : f32 to vector<12x1xf32>
    %112 = arith.divf %110, %111 : vector<12x1xf32>
    %113 = vector.broadcast %112 : vector<12x1xf32> to vector<12x64xf32>
    %114 = arith.subf %106, %113 : vector<12x64xf32>
    %115 = arith.mulf %114, %114 : vector<12x64xf32>
    %cst_34 = arith.constant dense<0.000000e+00> : vector<12xf32>
    %116 = vector.multi_reduction <add>, %115, %cst_34 [1] : vector<12x64xf32> to vector<12xf32>
    %117 = vector.shape_cast %116 : vector<12xf32> to vector<12x1xf32>
    %cst_35 = arith.constant 6.400000e+01 : f32
    %118 = vector.broadcast %cst_35 : f32 to vector<12x1xf32>
    %119 = arith.divf %117, %118 : vector<12x1xf32>
    %120 = vector.broadcast %112 : vector<12x1xf32> to vector<12x64xf32>
    %121 = arith.subf %106, %120 : vector<12x64xf32>
    %cst_36 = arith.constant 9.99999974E-6 : f32
    %122 = vector.broadcast %cst_36 : f32 to vector<12x1xf32>
    %123 = arith.addf %119, %122 : vector<12x1xf32>
    %124 = math.rsqrt %123 : vector<12x1xf32>
    %125 = vector.broadcast %124 : vector<12x1xf32> to vector<12x64xf32>
    %126 = arith.mulf %121, %125 : vector<12x64xf32>
    %127 = vector.broadcast %107 : vector<1x64xf32> to vector<12x64xf32>
    %128 = arith.mulf %126, %127 : vector<12x64xf32>
    %129 = vector.broadcast %108 : vector<1x64xf32> to vector<12x64xf32>
    %130 = arith.addf %128, %129 : vector<12x64xf32>
    %131 = arith.truncf %130 : vector<12x64xf32> to vector<12x64xbf16>
    %c128 = arith.constant 128 : index
    %c0_37 = arith.constant 0 : index
    %132 = vector.load %arg1[%c128, %c0_37] : memref<320x192xbf16, #tpu.memory_space<vmem>>, vector<64x128xbf16>
    %cst_38 = arith.constant dense<0.000000e+00> : vector<12x128xf32>
    %133 = tpu.matmul %131, %132, %cst_38 {dimension_numbers = #tpu.dot_dimension_numbers<[1], [0], [0], [1], [0, 0, 1, 1], [], []>} : vector<12x64xbf16>, vector<64x128xbf16>, vector<12x128xf32> -> vector<12x128xf32>
    %c6 = arith.constant 6 : index
    %c0_39 = arith.constant 0 : index
    %134 = vector.load %arg2[%c6, %c0_39] : memref<16x192xf32, #tpu.memory_space<vmem>>, vector<1x128xf32>
    %135 = vector.broadcast %134 : vector<1x128xf32> to vector<12x128xf32>
    %136 = arith.addf %133, %135 : vector<12x128xf32>
    %137 = arith.mulf %136, %136 : vector<12x128xf32>
    %138 = arith.mulf %136, %137 : vector<12x128xf32>
    %cst_40 = arith.constant 4.471500e-02 : f32
    %139 = vector.broadcast %cst_40 : f32 to vector<12x128xf32>
    %140 = arith.mulf %139, %138 : vector<12x128xf32>
    %141 = arith.addf %136, %140 : vector<12x128xf32>
    %cst_41 = arith.constant 0.797884583 : f32
    %142 = vector.broadcast %cst_41 : f32 to vector<12x128xf32>
    %143 = arith.mulf %142, %141 : vector<12x128xf32>
    %144 = math.tanh %143 : vector<12x128xf32>
    %cst_42 = arith.constant 1.000000e+00 : f32
    %145 = vector.broadcast %cst_42 : f32 to vector<12x128xf32>
    %146 = arith.addf %145, %144 : vector<12x128xf32>
    %cst_43 = arith.constant 5.000000e-01 : f32
    %147 = vector.broadcast %cst_43 : f32 to vector<12x128xf32>
    %148 = arith.mulf %147, %146 : vector<12x128xf32>
    %149 = arith.mulf %136, %148 : vector<12x128xf32>
    %150 = arith.truncf %149 : vector<12x128xf32> to vector<12x128xbf16>
    %c192 = arith.constant 192 : index
    %c0_44 = arith.constant 0 : index
    %151 = vector.load %arg1[%c192, %c0_44] : memref<320x192xbf16, #tpu.memory_space<vmem>>, vector<128x64xbf16>
    %cst_45 = arith.constant dense<0.000000e+00> : vector<12x64xf32>
    %152 = tpu.matmul %150, %151, %cst_45 {dimension_numbers = #tpu.dot_dimension_numbers<[1], [0], [0], [1], [0, 0, 1, 1], [], []>} : vector<12x128xbf16>, vector<128x64xbf16>, vector<12x64xf32> -> vector<12x64xf32>
    %c7 = arith.constant 7 : index
    %c0_46 = arith.constant 0 : index
    %153 = vector.load %arg2[%c7, %c0_46] : memref<16x192xf32, #tpu.memory_space<vmem>>, vector<1x64xf32>
    %154 = vector.broadcast %153 : vector<1x64xf32> to vector<12x64xf32>
    %155 = arith.addf %152, %154 : vector<12x64xf32>
    %156 = arith.addf %130, %155 : vector<12x64xf32>
    %c8_47 = arith.constant 8 : index
    %c0_48 = arith.constant 0 : index
    %157 = vector.load %arg2[%c8_47, %c0_48] : memref<16x192xf32, #tpu.memory_space<vmem>>, vector<1x64xf32>
    %c9 = arith.constant 9 : index
    %c0_49 = arith.constant 0 : index
    %158 = vector.load %arg2[%c9, %c0_49] : memref<16x192xf32, #tpu.memory_space<vmem>>, vector<1x64xf32>
    %cst_50 = arith.constant dense<0.000000e+00> : vector<12xf32>
    %159 = vector.multi_reduction <add>, %156, %cst_50 [1] : vector<12x64xf32> to vector<12xf32>
    %160 = vector.shape_cast %159 : vector<12xf32> to vector<12x1xf32>
    %cst_51 = arith.constant 6.400000e+01 : f32
    %161 = vector.broadcast %cst_51 : f32 to vector<12x1xf32>
    %162 = arith.divf %160, %161 : vector<12x1xf32>
    %163 = vector.broadcast %162 : vector<12x1xf32> to vector<12x64xf32>
    %164 = arith.subf %156, %163 : vector<12x64xf32>
    %165 = arith.mulf %164, %164 : vector<12x64xf32>
    %cst_52 = arith.constant dense<0.000000e+00> : vector<12xf32>
    %166 = vector.multi_reduction <add>, %165, %cst_52 [1] : vector<12x64xf32> to vector<12xf32>
    %167 = vector.shape_cast %166 : vector<12xf32> to vector<12x1xf32>
    %cst_53 = arith.constant 6.400000e+01 : f32
    %168 = vector.broadcast %cst_53 : f32 to vector<12x1xf32>
    %169 = arith.divf %167, %168 : vector<12x1xf32>
    %170 = vector.broadcast %162 : vector<12x1xf32> to vector<12x64xf32>
    %171 = arith.subf %156, %170 : vector<12x64xf32>
    %cst_54 = arith.constant 9.99999974E-6 : f32
    %172 = vector.broadcast %cst_54 : f32 to vector<12x1xf32>
    %173 = arith.addf %169, %172 : vector<12x1xf32>
    %174 = math.rsqrt %173 : vector<12x1xf32>
    %175 = vector.broadcast %174 : vector<12x1xf32> to vector<12x64xf32>
    %176 = arith.mulf %171, %175 : vector<12x64xf32>
    %177 = vector.broadcast %157 : vector<1x64xf32> to vector<12x64xf32>
    %178 = arith.mulf %176, %177 : vector<12x64xf32>
    %179 = vector.broadcast %158 : vector<1x64xf32> to vector<12x64xf32>
    %180 = arith.addf %178, %179 : vector<12x64xf32>
    %c0_55 = arith.constant 0 : index
    %c0_56 = arith.constant 0 : index
    %181 = vector.load %arg3[%c0_55, %c0_56] : memref<12x64xf32, #tpu.memory_space<vmem>>, vector<12x64xf32>
    tpu.vector_store %arg3[%c0_55, %c0_56], %180 {strides = array<i32>} : memref<12x64xf32, #tpu.memory_space<vmem>>, vector<12x64xf32>,
    return
  }
}

</mosaic_0001>

<bundles_post_ra>
// kernel: scene_transformer_forward.1
= control target key start
LH: loop header
LB: loop body
LE: loop exit
PB: predicated region body
PF: predicated region fallthrough
CT: control target
= control target key end

     0   :  { %v1284_v1 = vmov 0   ;;  %vm28_vm0 = vcmask 1043456   ;;  %vm92_vm1 = vcmask 523264   ;;  %v42_v22 = vlaneseq  ;;  %s1287_s14 = smov 112   ;;  %s1288_s15 = smov 64   ;;  %s1572_s1 = inlined_call_operand.vmem [shape: bf16[320,192], index: 1, kind: input, shape index: {}]   ;;  %s1573_s2 = inlined_call_operand.vmem [shape: f32[16,192], index: 2, kind: input, shape index: {}]   ;;  %s1574_s0 = inlined_call_operand.vmem [shape: f32[20,64], index: 0, kind: input, shape index: {}]   ;;  %s1575_s3 = inlined_call_operand.vmem [shape: f32[12,64], index: 3, kind: output, shape index: {}]  }
   0x1   :  { %v1212_v0 = vld [vmem:[%s1572_s1 + $0x4] ss:$8 sps:$4 sm:$0xff]   ;;  %128 = vmatprep.mubr.bf16.mxu1 %v1284_v1  ;;  %v1214_v2 = vld [vmem:[%s1572_s1] ss:$8 sps:$4 sm:$0xff]   ;;  %v1215_v3 = vld [vmem:[%s1572_s1 + $0x14] ss:$8 sps:$4 sm:$0xff]  }
   0x2   :  { %96 = vmatprep.subr.bf16.mxu1 %v1212_v0  ;;  %v1217_v4 = vld [vmem:[%s1572_s1 + $0x10] ss:$8 sps:$4 sm:$0xff]   ;;  %v1218_v5 = vld [vmem:[%s1572_s1 + $0x24] ss:$8 sps:$4 sm:$0xff]   ;;  %v1220_v6 = vld [vmem:[%s1572_s1 + $0x20] ss:$8 sps:$4 sm:$0xff]  }
   0x3   :  { %97 = vmatpush1.bf16.msra.mxu1 %v1214_v2  ;;  %v15_v7 = vld [vmem:[%s1573_s2] ss:$0 sm:$0xff]  ;;  %v16_v8 = vld [vmem:[%s1573_s2 + $0x1] ss:$0 sm:$0xff]  ;;  %v1221_v9 = vld [vmem:[%s1572_s1 + $0x34] ss:$8 sps:$4 sm:$0xff]  }
   0x4   :  { %98 = vmatprep.subr.bf16.mxu1 %v1215_v3  ;;  %v17_v10 = vld [vmem:[%s1574_s0] sm:$0xf]  ;;  %v19_v11 = vld [vmem:[%s1574_s0 + $0x4] sm:$0xf]  ;;  %v21_v13 = vld [vmem:[%s1574_s0 + $0x8] sm:$0xf] }
   0x5   :  { %v18_v12 = vadd.f32 %v17_v10, %v15_v7  ;;  %v23_v14 = vld [vmem:[%s1574_s0 + $0xc] sm:$0xff]  ;;  %v43_v23 = vshrl.u32 %v42_v22, 7  ;;  %v1285_v24 = vmov 0.0   ;;  %v1024_v26 = vld [vmem:[%s1573_s2 + $0x2] ss:$8 sm:$0x3] }
   0x6   :  { %v24_v15 = vadd.f32 %v23_v14, %v16_v8  ;;  %v1223_v16 = vld [vmem:[%s1572_s1 + $0x30] ss:$8 sps:$4 sm:$0xff]   ;;  %1107 = vmatprep.subr.bf16.mxu0 %v1285_v24  ;;  %vm1286_vm2 = vmmov 0   ;;  %s1289_s16 = smov 32   ;;  %s1290_s17 = smov 48   ;;  %vm143_vm3 = vcmask 130048  }
   0x7   :  { %99 = vmatpush1.bf16.msra.mxu1 %v1217_v4  ;;  %v20_v17 = vadd.f32 %v19_v11, %v18_v12  ;;  %v44_v25 = vsub.s32 0, %v43_v23  ;;  %v48_v27 = vsub.s32 1, %v43_v23  ;;  %1109 = vmatprep.mubr.msk.bf16.mxu0 %vm1286_vm2, %v1285_v24  ;;  %s1291_s18 = smov 16   ;;  %s1292_s19 = smov 96   ;;  %vm216_vm4 = vcmask 1045504  }
   0x8   :  { %100 = vmatprep.subr.bf16.mxu1 %v1218_v5  ;;  %v1356_v18 = vrot.slane %v24_v15, 4  ;;  %s1293_s20 = smov 80   ;;  %vm191_vm5 = vcmask 97280   ;;  %vm195_vm6 = vcmask 93184   ;;  %vm661_vm7 = vcmask 261120  }
   0x9   :  { %v22_v19 = vadd.f32 %v21_v13, %v20_v17  ;;  %v45_v28 = vrot.slane %v1024_v26, %v44_v25  ;;  %v49_v30 = vrot.slane %v1024_v26, %v48_v27  ;;  %vm664_vm8 = vcmask 392192  }
   0xa   :  { %vm752_vm9 = vcmask 519168  }
   0xb   :  { %101 = vmatpush1.bf16.msra.mxu1 %v1220_v6  ;;  %v1359_v20 = vsel %vm28_vm0, %v22_v19, %v1356_v18 }
   0xc   :  { %102 = vmatprep.subr.bf16.mxu1 %v1221_v9  ;;  %v30_v21 = vpack.c.bf16 %v1356_v18, %v1359_v20 }
   0xf   :  { %103 = vmatpush1.bf16.msra.mxu1 %v1223_v16 }
  0x10   :  { %1095 = vmatprep.subr.bf16.mxu1 %v1285_v24 }
  0x12   :  { %1033 = vmatmul.mubr.msk.bf16.vlgmr.msra.gmra.mrb[0].mxu1 %vm92_vm1, %v30_v21 }
  0x13   :  { %1097 = vmatprep.mubr.msk.bf16.mxu1 %vm1286_vm2, %v1285_v24 }
  0xe5   :  { %v130_v29 = vpop.f32.mrb[0].mxu1 }
  0xe6   :  { %v132_v31 = vpop.f32.mrb[1].mxu1  ;;  %v131_v33 = vadd.f32 %v130_v29, %v45_v28 }
  0xe7   :  { %v134_v32 = vpop.f32.mrb[2].mxu1  ;;  %v133_v36 = vadd.f32 %v132_v31, %v49_v30 }
  0xe8   :  { %v135_v34 = vadd.f32 %v134_v32, %v45_v28  ;;  %v136_v35 = vpop.f32.mrb[3].mxu1 }
  0xe9   :  { %v137_v37 = vadd.f32 %v136_v35, %v49_v30 }
  0xea   :  { %v139_v38 = vpack.c.bf16 %v135_v34, %v131_v33 }
  0xeb   :  { %v1373_v39 = vpack.c.bf16 %v137_v37, %v133_v36 }
  0xec   :  { %265 = vrot.lane.b32.xlu1 %v139_v38, %s1287_s14  ;;  %141 = vrot.lane.b32.xlu0 %v139_v38, %s1288_s15 }
  0xed   :  { %v218_v45 = vsel %vm216_vm4, %v1373_v39, 0 }
  0xf0   :  { %391 = vrot.lane.b32.xlu1 %v139_v38, %s1289_s16  ;;  %267 = vrot.lane.b32.xlu0 %v139_v38, %s1290_s17 }
  0xf4   :  { %514 = vrot.lane.b32.xlu1 %v139_v38, %s1291_s18  ;;  %389 = vrot.lane.b32.xlu0 %v139_v38, %s1292_s19 }
  0xf8   :  { %512 = vrot.lane.b32.xlu0 %v139_v38, %s1293_s20 }
 0x15e   :  { %v142_v40 = vpop.permute.xlu0 %141  ;;  %v266_v42 = vpop.permute.xlu1 %265 }
 0x15f   :  { %v148_v41 = vsel %vm143_vm3, %v142_v40, 0 }
 0x160   :  { %1096 = vmatpush3.bf16.xpose.msra.mxu1 %v148_v41 }
 0x161   :  { %1101 = vmatprep.subr.bf16.mxu1 %v1285_v24 }
 0x162   :  { %v268_v43 = vpop.permute.xlu0 %267  ;;  %v392_v46 = vpop.permute.xlu1 %391 }
 0x163   :  { %v273_v44 = vsel %vm143_vm3, %v268_v43, 0  ;;  %v397_v47 = vsel %vm143_vm3, %v392_v46, 0 }
 0x164   :  { %1108 = vmatpush3.bf16.xpose.msra.mxu0 %v273_v44 }
 0x165   :  { %1119 = vmatprep.subr.bf16.mxu0 %v1285_v24 }
 0x166   :  { %v515_v48 = vpop.permute.xlu1 %514  ;;  %v390_v49 = vpop.permute.xlu0 %389 }
 0x167   :  { %1098 = vmatmul.mubr.msk.bf16.vlgmr.msra.gmra.mrb[4].mxu1 %vm143_vm3, %v139_v38  ;;  %v520_v50 = vsel %vm143_vm3, %v515_v48, 0 }
 0x168   :  { %1102 = vmatpush3.bf16.msra.mxu1 %v218_v45  ;;  %1103 = vmatprep.mubr.msk.bf16.mxu1 %vm1286_vm2, %v1285_v24 }
 0x169   :  { %1113 = vmatprep.subr.bf16.mxu1 %v1285_v24 }
 0x16a   :  { %v513_v51 = vpop.permute.xlu0 %512 }
 0x16b   :  { %1110 = vmatmul.mubr.msk.bf16.vlgmr.msra.gmra.mrb[0].mxu0 %vm143_vm3, %v266_v42 }
 0x16c   :  { %1120 = vmatpush3.bf16.xpose.msra.mxu0 %v397_v47  ;;  %1121 = vmatprep.mubr.msk.bf16.mxu0 %vm1286_vm2, %v1285_v24 }
 0x16d   :  { %1131 = vmatprep.subr.bf16.mxu0 %v1285_v24 }
 0x173   :  { %1122 = vmatmul.mubr.msk.bf16.vlgmr.msra.gmra.mrb[4].mxu0 %vm143_vm3, %v390_v49 }
 0x174   :  { %1132 = vmatpush3.bf16.xpose.msra.mxu0 %v520_v50  ;;  %1133 = vmatprep.mubr.msk.bf16.mxu0 %vm1286_vm2, %v1285_v24 }
 0x175   :  { %1143 = vmatprep.subr.bf16.mxu0 %v1285_v24 }
 0x17b   :  { %1134 = vmatmul.mubr.msk.bf16.vlgmr.msra.gmra.mrb[8].mxu0 %vm143_vm3, %v513_v51 }
 0x17c   :  { %1151 = vmatprep.mubr.msk.bf16.mxu0 %vm1286_vm2, %v1285_v24 }
 0x23a   :  { %v184_v52 = vpop.f32.mrb[4].mxu1 }
 0x23b   :  { %v1099_v53 = vpop.f32.mrb[5].mxu1  ;;  %v192_v54 = vsel %vm191_vm5, %v184_v52, -inf }
 0x23c   :  { %193 = vmax.xlane.f32.xlu1 %v192_v54  ;;  %v187_v55 = vpop.f32.mrb[6].mxu1 }
 0x23d   :  { %v1100_v56 = vpop.f32.mrb[7].mxu1  ;;  %v196_v63 = vsel %vm195_vm6, %v187_v55, -inf }
 0x23e   :  { %v309_v57 = vpop.f32.mrb[0].mxu0 }
 0x23f   :  { %v1111_v58 = vpop.f32.mrb[1].mxu0  ;;  %v316_v59 = vsel %vm191_vm5, %v309_v57, -inf }
 0x240   :  { %317 = vmax.xlane.f32.xlu0 %v316_v59  ;;  %v312_v60 = vpop.f32.mrb[2].mxu0 }
 0x241   :  { %v1112_v61 = vpop.f32.mrb[3].mxu0  ;;  %v319_v62 = vsel %vm195_vm6, %v312_v60, -inf }
 0x242   :  { %320 = vmax.xlane.f32.xlu1 %v319_v62 }
 0x244   :  { %197 = vmax.xlane.f32.xlu0 %v196_v63 }
 0x246   :  { %v433_v0 = vpop.f32.mrb[4].mxu0 }
 0x247   :  { %v1123_v1 = vpop.f32.mrb[5].mxu0  ;;  %v440_v2 = vsel %vm191_vm5, %v433_v0, -inf }
 0x248   :  { %441 = vmax.xlane.f32.xlu0 %v440_v2  ;;  %v436_v3 = vpop.f32.mrb[6].mxu0 }
 0x249   :  { %v1124_v4 = vpop.f32.mrb[7].mxu0  ;;  %v443_v5 = vsel %vm195_vm6, %v436_v3, -inf }
 0x24a   :  { %444 = vmax.xlane.f32.xlu1 %v443_v5 }
 0x24e   :  { %v556_v6 = vpop.f32.mrb[8].mxu0 }
 0x24f   :  { %v1135_v7 = vpop.f32.mrb[9].mxu0  ;;  %v563_v8 = vsel %vm191_vm5, %v556_v6, -inf }
 0x250   :  { %564 = vmax.xlane.f32.xlu0 %v563_v8  ;;  %v1411_v9 = vpop.f32.mrb[10].mxu0 }
 0x251   :  { %v1136_v10 = vpop.f32.mrb[11].mxu0  ;;  %v566_v11 = vsel %vm195_vm6, %v1411_v9, -inf }
 0x25b   :  { %459 = vrot.lane.b32.xlu1 %v1373_v39, %s1292_s19 }
 0x266   :  { %336 = vrot.lane.b32.xlu0 %v1373_v39, %s1287_s14 }
 0x27f   :  { %567 = vmax.xlane.f32.xlu1 %v566_v11 }
 0x290   :  { %582 = vrot.lane.b32.xlu1 %v1373_v39, %s1293_s20 }
 0x2c9   :  { %v194_v12 = vpop.xlane.xlu1 %193 }
 0x2ca   :  { %v199_v13 = vsub.f32 %v184_v52, %v194_v12 }
 0x2cc   :  { %v201_v21 = vmul.f32 1.442695, %v199_v13 }
 0x2cd   :  { %v318_v14 = vpop.xlane.xlu0 %317 }
 0x2ce   :  { %v322_v15 = vsub.f32 %v309_v57, %v318_v14 }
 0x2cf   :  { %v321_v16 = vpop.xlane.xlu1 %320 }
 0x2d0   :  { %v324_v17 = vmul.f32 1.442695, %v322_v15  ;;  %v323_v19 = vsub.f32 %v312_v60, %v321_v16 }
 0x2d1   :  { %v198_v22 = vpop.xlane.xlu0 %197 }
 0x2d2   :  { %1240 = vpow2.f32 %v324_v17  ;;  %v326_v23 = vmul.f32 1.442695, %v323_v19  ;;  %v200_v25 = vsub.f32 %v187_v55, %v198_v22  ;;  %v1224_v17 = vld [vmem:[%s1572_s1 + $0x40] ss:$8 sps:$4 sm:$0xff]  }
 0x2d3   :  { %1144 = vmatpush3.bf16.msra.mxu0 %v1224_v17 }
 0x2d4   :  { %1242 = vpow2.f32 %v326_v23  ;;  %v203_v26 = vmul.f32 1.442695, %v200_v25  ;;  %1145 = vmatprep.subr.bf16.mxu0 %v1285_v24 }
 0x2d5   :  { %1244 = vpow2.f32 %v201_v21  ;;  %v442_v27 = vpop.xlane.xlu0 %441  ;;  %v1225_v21 = vld [vmem:[%s1572_s1 + $0x50] ss:$8 sps:$4 sm:$0xff]  }
 0x2d6   :  { %1246 = vpow2.f32 %v203_v26  ;;  %v446_v28 = vsub.f32 %v433_v0, %v442_v27 }
 0x2d7   :  { %v445_v29 = vpop.xlane.xlu1 %444  ;;  %1146 = vmatpush3.bf16.msra.mxu0 %v1225_v21 }
 0x2d8   :  { %v448_v30 = vmul.f32 1.442695, %v446_v28  ;;  %v447_v31 = vsub.f32 %v436_v3, %v445_v29  ;;  %v1226_v28 = vld [vmem:[%s1572_s1 + $0x60] ss:$8 sps:$4 sm:$0xff]   ;;  %1147 = vmatprep.subr.bf16.mxu0 %v1285_v24 }
 0x2da   :  { %1248 = vpow2.f32 %v448_v30  ;;  %v450_v32 = vmul.f32 1.442695, %v447_v31 }
 0x2db   :  { %v460_v50 = vpop.permute.xlu1 %459  ;;  %1148 = vmatpush3.bf16.msra.mxu0 %v1226_v28  ;;  %v1231_v28 = vld [vmem:[%s1572_s1 + $0xb0] ss:$8 sps:$4 sm:$0xff]  }
 0x2dc   :  { %v1241_v33 = vpop.eup %1240  ;;  %1250 = vpow2.f32 %v450_v32  ;;  %v465_v52 = vsel %vm216_vm4, %v460_v50, 0  ;;  %1149 = vmatprep.subr.bf16.mxu0 %v1285_v24 }
 0x2dd   :  { %v565_v34 = vpop.xlane.xlu0 %564  ;;  %v328_v35 = vsel %vm191_vm5, %v1241_v33, 0.0 }
 0x2de   :  { %v1243_v36 = vpop.eup %1242  ;;  %v569_v37 = vsub.f32 %v556_v6, %v565_v34  ;;  %329 = vadd.xlane.f32.xlu0 %v328_v35  ;;  %v1227_v35 = vld [vmem:[%s1572_s1 + $0x70] ss:$8 sps:$4 sm:$0xff]  }
 0x2df   :  { %v1245_v38 = vpop.eup %1244  ;;  %v331_v39 = vsel %vm195_vm6, %v1243_v36, 0.0  ;;  %v334_v40 = vpack.c.bf16 %v1243_v36, %v1241_v33  ;;  %1150 = vmatpush3.bf16.msra.mxu0 %v1227_v35 }
 0x2e0   :  { %v1247_v41 = vpop.eup %1246  ;;  %v571_v42 = vmul.f32 1.442695, %v569_v37  ;;  %332 = vadd.xlane.f32.xlu1 %v331_v39  ;;  %v205_v55 = vsel %vm191_vm5, %v1245_v38, 0.0  ;;  %1167 = vmatprep.subr.bf16.mxu0 %v1285_v24 }
 0x2e1   :  { %v337_v43 = vpop.permute.xlu0 %336  ;;  %v211_v44 = vpack.c.bf16 %v1247_v41, %v1245_v38  ;;  %v208_v0 = vsel %vm195_vm6, %v1247_v41, 0.0 }
 0x2e2   :  { %1252 = vpow2.f32 %v571_v42  ;;  %v342_v45 = vsel %vm216_vm4, %v337_v43, 0 }
 0x2e3   :  { %1104 = vmatmul.mubr.msk.bf16.vlgmr.msra.gmra.mrb[8].mxu1 %vm191_vm5, %v211_v44 }
 0x2e4   :  { %v1249_v46 = vpop.eup %1248  ;;  %1114 = vmatpush3.bf16.msra.mxu1 %v342_v45  ;;  %1115 = vmatprep.mubr.msk.bf16.mxu1 %vm1286_vm2, %v1285_v24 }
 0x2e5   :  { %v452_v47 = vsel %vm191_vm5, %v1249_v46, 0.0  ;;  %1125 = vmatprep.subr.bf16.mxu1 %v1285_v24 }
 0x2e6   :  { %v1251_v48 = vpop.eup %1250  ;;  %453 = vadd.xlane.f32.xlu0 %v452_v47 }
 0x2e7   :  { %v458_v49 = vpack.c.bf16 %v1251_v48, %v1249_v46  ;;  %v455_v51 = vsel %vm195_vm6, %v1251_v48, 0.0 }
 0x2ea   :  { %456 = vadd.xlane.f32.xlu0 %v455_v51 }
 0x2eb   :  { %1116 = vmatmul.mubr.msk.bf16.vlgmr.msra.gmra.mrb[12].mxu1 %vm191_vm5, %v334_v40 }
 0x2ec   :  { %v1253_v53 = vpop.eup %1252  ;;  %1126 = vmatpush3.bf16.msra.mxu1 %v465_v52  ;;  %1127 = vmatprep.mubr.msk.bf16.mxu1 %vm1286_vm2, %v1285_v24 }
 0x2ed   :  { %v575_v54 = vsel %vm191_vm5, %v1253_v53, 0.0  ;;  %1137 = vmatprep.subr.bf16.mxu1 %v1285_v24 }
 0x2ee   :  { %576 = vadd.xlane.f32.xlu1 %v575_v54 }
 0x2f2   :  { %206 = vadd.xlane.f32.xlu1 %v205_v55 }
 0x2f3   :  { %1128 = vmatmul.mubr.msk.bf16.vlgmr.msra.gmra.mrb[16].mxu1 %vm191_vm5, %v458_v49 }
 0x2f4   :  { %1139 = vmatprep.mubr.msk.bf16.mxu1 %vm1286_vm2, %v1285_v24 }
 0x30c   :  { %v568_v56 = vpop.xlane.xlu1 %567 }
 0x30d   :  { %v570_v57 = vsub.f32 %v1411_v9, %v568_v56 }
 0x30f   :  { %v573_v58 = vmul.f32 1.442695, %v570_v57 }
 0x310   :  { %v583_v59 = vpop.permute.xlu1 %582 }
 0x311   :  { %1254 = vpow2.f32 %v573_v58  ;;  %v588_v60 = vsel %vm216_vm4, %v583_v59, 0 }
 0x312   :  { %1138 = vmatpush3.bf16.msra.mxu1 %v588_v60 }
 0x313   :  { %1155 = vmatprep.subr.bf16.mxu1 %v1285_v24 }
 0x31b   :  { %v1255_v61 = vpop.eup %1254 }
 0x31c   :  { %v578_v62 = vsel %vm195_vm6, %v1255_v61, 0.0  ;;  %v581_v63 = vpack.c.bf16 %v1255_v61, %v1253_v53 }
 0x31d   :  { %579 = vadd.xlane.f32.xlu0 %v578_v62 }
 0x31e   :  { %1140 = vmatmul.mubr.msk.bf16.vlgmr.msra.gmra.mrb[20].mxu1 %vm191_vm5, %v581_v63 }
 0x31f   :  { %1163 = vmatprep.mubr.msk.bf16.mxu1 %vm1286_vm2, %v1285_v24 }
 0x321   :  { %209 = vadd.xlane.f32.xlu0 %v208_v0 }
 0x36b   :  { %v330_v1 = vpop.xlane.xlu0 %329 }
 0x36c   :  { %1256 = vrcp.f32 %v330_v1 }
 0x36d   :  { %v333_v2 = vpop.xlane.xlu1 %332 }
 0x36e   :  { %1258 = vrcp.f32 %v333_v2 }
 0x373   :  { %v454_v3 = vpop.xlane.xlu0 %453 }
 0x374   :  { %1260 = vrcp.f32 %v454_v3  ;;  %v676_v3 = vld [vmem:[%s1573_s2 + $0x3] ss:$0 sm:$0xff] }
 0x376   :  { %v1257_v10 = vpop.eup %1256 }
 0x377   :  { %v457_v8 = vpop.xlane.xlu0 %456 }
 0x378   :  { %1262 = vrcp.f32 %v457_v8  ;;  %v1259_v12 = vpop.eup %1258 }
 0x37b   :  { %v577_v33 = vpop.xlane.xlu1 %576 }
 0x37c   :  { %1264 = vrcp.f32 %v577_v33 }
 0x37e   :  { %v1261_v23 = vpop.eup %1260 }
 0x37f   :  { %v207_v46 = vpop.xlane.xlu1 %206 }
 0x382   :  { %v1263_v26 = vpop.eup %1262 }
 0x386   :  { %v1265_v37 = vpop.eup %1264 }
 0x3aa   :  { %v580_v34 = vpop.xlane.xlu0 %579 }
 0x3ab   :  { %1266 = vrcp.f32 %v580_v34 }
 0x3ae   :  { %v210_v45 = vpop.xlane.xlu0 %209 }
 0x3af   :  { %1268 = vrcp.f32 %v210_v45 }
 0x3b0   :  { %1270 = vrcp.f32 %v207_v46  ;;  %v1232_v46 = vld [vmem:[%s1572_s1 + $0xc0] ss:$8 sps:$4 sm:$0xff]  }
 0x3b5   :  { %v1267_v39 = vpop.eup %1266 }
 0x3b6   :  { %v1448_v4 = vpop.f32.mrb[8].mxu1 }
 0x3b7   :  { %v1105_v5 = vpop.f32.mrb[9].mxu1 }
 0x3b8   :  { %v1450_v6 = vpop.f32.mrb[10].mxu1 }
 0x3b9   :  { %v1106_v7 = vpop.f32.mrb[11].mxu1  ;;  %v1269_v49 = vpop.eup %1268 }
 0x3ba   :  { %v1271_v52 = vpop.eup %1270  ;;  %v264_v56 = vmul.f32 %v1269_v49, %v1450_v6  ;;  %v1235_v49 = vld [vmem:[%s1572_s1 + $0xf0] ss:$8 sps:$4 sm:$0xff]  }
 0x3bb   :  { %v263_v55 = vmul.f32 %v1271_v52, %v1448_v4  ;;  %v1238_v52 = vld [vmem:[%s1572_s1 + $0x120] ss:$8 sps:$4 sm:$0xff]  }
 0x3be   :  { %v378_v9 = vpop.f32.mrb[12].mxu1 }
 0x3bf   :  { %v1117_v11 = vpop.f32.mrb[13].mxu1  ;;  %v387_v14 = vmul.f32 %v1257_v10, %v378_v9 }
 0x3c0   :  { %v381_v13 = vpop.f32.mrb[14].mxu1 }
 0x3c1   :  { %v388_v15 = vmul.f32 %v1259_v12, %v381_v13  ;;  %v1118_v16 = vpop.f32.mrb[15].mxu1 }
 0x3c3   :  { %v1197_v19 = vpack.i.bf16 %v388_v15, %v387_v14 }
 0x3c5   :  { %1198 = vrot.lane.b32.xlu1 %v1197_v19, %s1291_s18 }
 0x3c6   :  { %v501_v22 = vpop.f32.mrb[16].mxu1 }
 0x3c7   :  { %v1129_v25 = vpop.f32.mrb[17].mxu1  ;;  %v510_v29 = vmul.f32 %v1261_v23, %v501_v22 }
 0x3c8   :  { %v504_v27 = vpop.f32.mrb[18].mxu1 }
 0x3c9   :  { %v511_v30 = vmul.f32 %v1263_v26, %v504_v27  ;;  %v1130_v31 = vpop.f32.mrb[19].mxu1  ;;  %v1229_v26 = vld [vmem:[%s1572_s1 + $0x90] ss:$8 sps:$4 sm:$0xff]   ;;  %v1230_v27 = vld [vmem:[%s1572_s1 + $0xa0] ss:$8 sps:$4 sm:$0xff]  }
 0x3cb   :  { %v1202_v32 = vpack.i.bf16 %v511_v30, %v510_v29 }
 0x3cd   :  { %1203 = vrot.lane.b32.xlu0 %v1202_v32, %s1289_s16 }
 0x3f1   :  { %v624_v36 = vpop.f32.mrb[20].mxu1 }
 0x3f2   :  { %v1141_v38 = vpop.f32.mrb[21].mxu1  ;;  %v633_v41 = vmul.f32 %v1265_v37, %v624_v36  ;;  %v747_v36 = vld [vmem:[%s1573_s2 + $0x4] ss:$0 sm:$0xff] }
 0x3f3   :  { %v627_v40 = vpop.f32.mrb[22].mxu1 }
 0x3f4   :  { %v634_v42 = vmul.f32 %v1267_v39, %v627_v40  ;;  %v1142_v43 = vpop.f32.mrb[23].mxu1 }
 0x3f6   :  { %v1207_v44 = vpack.i.bf16 %v634_v42, %v633_v41  ;;  %v748_v41 = vld [vmem:[%s1573_s2 + $0x5] ss:$0 sm:$0xff] }
 0x3f8   :  { %1208 = vrot.lane.b32.xlu1 %v1207_v44, %s1290_s17 }
 0x437   :  { %v1199_v47 = vpop.permute.xlu1 %1198 }
 0x438   :  { %v1201_v50 = vunpack.i.h.bf16 %v1199_v47  ;;  %v1200_v51 = vunpack.i.l.bf16 %v1199_v47  ;;  %v1233_v47 = vld [vmem:[%s1572_s1 + $0xd0] ss:$8 sps:$4 sm:$0xff]  }
 0x43a   :  { %v659_v58 = vsel %vm143_vm3, %v263_v55, %v1200_v51  ;;  %v660_v59 = vsel %vm143_vm3, %v264_v56, %v1201_v50  ;;  %v1236_v50 = vld [vmem:[%s1572_s1 + $0x100] ss:$8 sps:$4 sm:$0xff]   ;;  %v1237_v51 = vld [vmem:[%s1572_s1 + $0x110] ss:$8 sps:$4 sm:$0xff]  }
 0x43f   :  { %v1204_v48 = vpop.permute.xlu0 %1203 }
 0x440   :  { %v1206_v53 = vunpack.i.h.bf16 %v1204_v48  ;;  %v1205_v54 = vunpack.i.l.bf16 %v1204_v48  ;;  %v1234_v48 = vld [vmem:[%s1572_s1 + $0xe0] ss:$8 sps:$4 sm:$0xff]  }
 0x442   :  { %v663_v62 = vsel %vm661_vm7, %v660_v59, %v1206_v53  ;;  %v662_v63 = vsel %vm661_vm7, %v659_v58, %v1205_v54  ;;  %v1239_v53 = vld [vmem:[%s1572_s1 + $0x130] ss:$8 sps:$4 sm:$0xff]   ;;  %v790_v54 = vld [vmem:[%s1573_s2 + $0x6] ss:$0 sm:$0xff] }
 0x46a   :  { %v1209_v57 = vpop.permute.xlu1 %1208 }
 0x46b   :  { %v1211_v60 = vunpack.i.h.bf16 %v1209_v57  ;;  %v1210_v61 = vunpack.i.l.bf16 %v1209_v57 }
 0x46d   :  { %v665_v0 = vsel %vm664_vm8, %v662_v63, %v1210_v61  ;;  %v666_v1 = vsel %vm664_vm8, %v663_v62, %v1211_v60 }
 0x46e   :  { %v667_v2 = vpack.c.bf16 %v666_v1, %v665_v0 }
 0x470   :  { %1152 = vmatmul.mubr.msk.bf16.vlgmr.msra.gmra.mrb[12].mxu0 %vm92_vm1, %v667_v2 }
 0x471   :  { %1183 = vmatprep.mubr.msk.bf16.mxu0 %vm1286_vm2, %v1285_v24  ;;  %1168 = vmatpush3.bf16.msra.mxu0 %v1232_v46 }
 0x472   :  { %1169 = vmatprep.subr.bf16.mxu0 %v1285_v24 }
 0x475   :  { %1170 = vmatpush3.bf16.msra.mxu0 %v1233_v47  ;;  %v987_v47 = vld [vmem:[%s1573_s2 + $0x11] ss:$0 sm:$0xff] }
 0x476   :  { %1171 = vmatprep.subr.bf16.mxu0 %v1285_v24 }
 0x479   :  { %1172 = vmatpush3.bf16.msra.mxu0 %v1234_v48 }
 0x47a   :  { %1173 = vmatprep.subr.bf16.mxu0 %v1285_v24 }
 0x47d   :  { %1174 = vmatpush3.bf16.msra.mxu0 %v1235_v49 }
 0x47e   :  { %1175 = vmatprep.subr.bf16.mxu0 %v1285_v24 }
 0x481   :  { %1176 = vmatpush3.bf16.msra.mxu0 %v1236_v50 }
 0x482   :  { %1177 = vmatprep.subr.bf16.mxu0 %v1285_v24 }
 0x485   :  { %1178 = vmatpush3.bf16.msra.mxu0 %v1237_v51 }
 0x486   :  { %1179 = vmatprep.subr.bf16.mxu0 %v1285_v24 }
 0x489   :  { %1180 = vmatpush3.bf16.msra.mxu0 %v1238_v52 }
 0x48a   :  { %1181 = vmatprep.subr.bf16.mxu0 %v1285_v24 }
 0x48d   :  { %1182 = vmatpush3.bf16.msra.mxu0 %v1239_v53 }
 0x543   :  { %v738_v4 = vpop.f32.mrb[12].mxu0 }
 0x544   :  { %v739_v5 = vadd.f32 %v738_v4, %v676_v3  ;;  %v1153_v6 = vpop.f32.mrb[13].mxu0 }
 0x545   :  { %v741_v7 = vpop.f32.mrb[14].mxu0 }
 0x546   :  { %v742_v8 = vadd.f32 %v741_v7, %v676_v3  ;;  %v1154_v9 = vpop.f32.mrb[15].mxu0  ;;  %v745_v10 = vadd.f32 %v739_v5, %v1359_v20 }
 0x548   :  { %v749_v11 = vsel %vm92_vm1, %v745_v10, 0.0  ;;  %v746_v12 = vadd.f32 %v742_v8, %v1356_v18  ;;  %v1228_v18 = vld [vmem:[%s1572_s1 + $0x80] ss:$8 sps:$4 sm:$0xff]  }
 0x549   :  { %750 = vadd.xlane.f32.xlu1 %v749_v11  ;;  %1156 = vmatpush3.bf16.msra.mxu1 %v1228_v18 }
 0x54a   :  { %v753_v13 = vsel %vm752_vm9, %v746_v12, 0.0  ;;  %1157 = vmatprep.subr.bf16.mxu1 %v1285_v24 }
 0x54b   :  { %754 = vadd.xlane.f32.xlu0 %v753_v13 }
 0x54d   :  { %1158 = vmatpush3.bf16.msra.mxu1 %v1229_v26 }
 0x54e   :  { %1159 = vmatprep.subr.bf16.mxu1 %v1285_v24 }
 0x551   :  { %1160 = vmatpush3.bf16.msra.mxu1 %v1230_v27 }
 0x552   :  { %1161 = vmatprep.subr.bf16.mxu1 %v1285_v24 }
 0x555   :  { %1162 = vmatpush3.bf16.msra.mxu1 %v1231_v28 }
 0x5d6   :  { %v751_v14 = vpop.xlane.xlu1 %750 }
 0x5d7   :  { %v757_v15 = vmul.f32 0.015625, %v751_v14 }
 0x5d8   :  { %v755_v16 = vpop.xlane.xlu0 %754 }
 0x5d9   :  { %v759_v17 = vsub.f32 %v745_v10, %v757_v15  ;;  %v758_v19 = vmul.f32 0.015625, %v755_v16  ;;  %v894_v15 = vld [vmem:[%s1573_s2 + $0x7] ss:$0 sm:$0xff] }
 0x5db   :  { %v760_v21 = vsub.f32 %v746_v12, %v758_v19  ;;  %v761_v22 = vmul.f32 %v759_v17, %v759_v17 }
 0x5dd   :  { %v763_v23 = vsel %vm92_vm1, %v761_v22, 0.0  ;;  %v762_v25 = vmul.f32 %v760_v21, %v760_v21 }
 0x5de   :  { %764 = vadd.xlane.f32.xlu0 %v763_v23 }
 0x5df   :  { %v766_v20 = vsel %vm752_vm9, %v762_v25, 0.0 }
 0x5e0   :  { %767 = vadd.xlane.f32.xlu1 %v766_v20 }
 0x66b   :  { %v765_v29 = vpop.xlane.xlu0 %764 }
 0x66c   :  { %v769_v30 = vmul.f32 0.015625, %v765_v29 }
 0x66d   :  { %v768_v31 = vpop.xlane.xlu1 %767 }
 0x66e   :  { %v771_v32 = vadd.f32 1e-05, %v769_v30  ;;  %v770_v33 = vmul.f32 0.015625, %v768_v31 }
 0x670   :  { %1272 = vrsqrt.f32 %v771_v32  ;;  %v772_v34 = vadd.f32 1e-05, %v770_v33 }
 0x672   :  { %1274 = vrsqrt.f32 %v772_v34 }
 0x67a   :  { %v1273_v35 = vpop.eup %1272 }
 0x67b   :  { %v775_v37 = vmul.f32 %v1273_v35, %v759_v17 }
 0x67c   :  { %v1275_v38 = vpop.eup %1274 }
 0x67d   :  { %v777_v39 = vmul.f32 %v775_v37, %v747_v36  ;;  %v776_v40 = vmul.f32 %v1275_v38, %v760_v21 }
 0x67f   :  { %v778_v42 = vmul.f32 %v776_v40, %v747_v36  ;;  %v1508_v43 = vadd.f32 %v777_v39, %v748_v41 }
 0x681   :  { %v1510_v44 = vadd.f32 %v778_v42, %v748_v41 }
 0x683   :  { %v781_v45 = vpack.c.bf16 %v1510_v44, %v1508_v43 }
 0x685   :  { %1164 = vmatmul.mubr.msk.bf16.vlgmr.msra.gmra.mrb[24].mxu1 %vm92_vm1, %v781_v45 }
 0x758   :  { %v852_v55 = vpop.f32.mrb[24].mxu1 }
 0x759   :  { %v853_v56 = vadd.f32 %v852_v55, %v790_v54  ;;  %v1165_v57 = vpop.f32.mrb[25].mxu1 }
 0x75a   :  { %v855_v58 = vpop.f32.mrb[26].mxu1 }
 0x75b   :  { %v859_v59 = vmul.f32 %v853_v56, %v853_v56  ;;  %v856_v60 = vadd.f32 %v855_v58, %v790_v54  ;;  %v1166_v61 = vpop.f32.mrb[27].mxu1 }
 0x75d   :  { %v861_v62 = vmul.f32 %v859_v59, %v853_v56  ;;  %v860_v63 = vmul.f32 %v856_v60, %v856_v60 }
 0x75f   :  { %v863_v0 = vmul.f32 0.044715, %v861_v62  ;;  %v862_v24 = vmul.f32 %v860_v63, %v856_v60 }
 0x761   :  { %v865_v1 = vadd.f32 %v863_v0, %v853_v56  ;;  %v864_v2 = vmul.f32 0.044715, %v862_v24 }
 0x763   :  { %v867_v3 = vmul.f32 0.7978846, %v865_v1  ;;  %v866_v4 = vadd.f32 %v864_v2, %v856_v60 }
 0x765   :  { %1276 = vtanh.f32 %v867_v3  ;;  %v868_v5 = vmul.f32 0.7978846, %v866_v4 }
 0x767   :  { %1278 = vtanh.f32 %v868_v5 }
 0x76f   :  { %v1277_v6 = vpop.eup %1276 }
 0x770   :  { %v871_v7 = vadd.f32 1.0, %v1277_v6 }
 0x771   :  { %v1279_v8 = vpop.eup %1278 }
 0x772   :  { %v873_v9 = vmul.f32 0.5, %v871_v7  ;;  %v872_v10 = vadd.f32 1.0, %v1279_v8 }
 0x774   :  { %v874_v11 = vmul.f32 0.5, %v872_v10  ;;  %v875_v12 = vmul.f32 %v873_v9, %v853_v56 }
 0x776   :  { %v876_v13 = vmul.f32 %v874_v11, %v856_v60 }
 0x778   :  { %v877_v14 = vpack.c.bf16 %v876_v13, %v875_v12 }
 0x77a   :  { %1184 = vmatmul.mubr.bf16.vlgmr.msra.gmra.mrb[16].mxu0 %v877_v14 }
 0x84d   :  { %v977_v16 = vpop.f32.mrb[16].mxu0 }
 0x84e   :  { %v978_v17 = vadd.f32 %v977_v16, %v894_v15  ;;  %v1185_v19 = vpop.f32.mrb[17].mxu0 }
 0x84f   :  { %v980_v21 = vpop.f32.mrb[18].mxu0 }
 0x850   :  { %v981_v22 = vadd.f32 %v980_v21, %v894_v15  ;;  %v1186_v23 = vpop.f32.mrb[19].mxu0  ;;  %v984_v25 = vadd.f32 %v978_v17, %v1508_v43 }
 0x852   :  { %v988_v20 = vsel %vm92_vm1, %v984_v25, 0.0  ;;  %v985_v18 = vadd.f32 %v981_v22, %v1510_v44  ;;  %v986_v44 = vld [vmem:[%s1573_s2 + $0x10] ss:$0 sm:$0xff] }
 0x853   :  { %989 = vadd.xlane.f32.xlu0 %v988_v20 }
 0x854   :  { %v991_v26 = vsel %vm752_vm9, %v985_v18, 0.0 }
 0x855   :  { %992 = vadd.xlane.f32.xlu1 %v991_v26 }
 0x8e0   :  { %v990_v27 = vpop.xlane.xlu0 %989 }
 0x8e1   :  { %v994_v28 = vmul.f32 0.015625, %v990_v27 }
 0x8e2   :  { %v993_v29 = vpop.xlane.xlu1 %992 }
 0x8e3   :  { %v996_v30 = vsub.f32 %v984_v25, %v994_v28  ;;  %v995_v31 = vmul.f32 0.015625, %v993_v29 }
 0x8e5   :  { %v997_v32 = vsub.f32 %v985_v18, %v995_v31  ;;  %v998_v33 = vmul.f32 %v996_v30, %v996_v30 }
 0x8e7   :  { %v1000_v34 = vsel %vm92_vm1, %v998_v33, 0.0  ;;  %v999_v35 = vmul.f32 %v997_v32, %v997_v32 }
 0x8e8   :  { %1001 = vadd.xlane.f32.xlu0 %v1000_v34 }
 0x8e9   :  { %v1003_v36 = vsel %vm752_vm9, %v999_v35, 0.0 }
 0x8ea   :  { %1004 = vadd.xlane.f32.xlu1 %v1003_v36 }
 0x975   :  { %v1002_v37 = vpop.xlane.xlu0 %1001 }
 0x976   :  { %v1006_v38 = vmul.f32 0.015625, %v1002_v37 }
 0x977   :  { %v1005_v39 = vpop.xlane.xlu1 %1004 }
 0x978   :  { %v1008_v40 = vadd.f32 1e-05, %v1006_v38  ;;  %v1007_v41 = vmul.f32 0.015625, %v1005_v39 }
 0x97a   :  { %1280 = vrsqrt.f32 %v1008_v40  ;;  %v1009_v42 = vadd.f32 1e-05, %v1007_v41 }
 0x97c   :  { %1282 = vrsqrt.f32 %v1009_v42 }
 0x984   :  { %v1281_v43 = vpop.eup %1280 }
 0x985   :  { %v1012_v45 = vmul.f32 %v1281_v43, %v996_v30 }
 0x986   :  { %v1283_v46 = vpop.eup %1282 }
 0x987   :  { %v1014_v48 = vmul.f32 %v1012_v45, %v986_v44  ;;  %v1013_v49 = vmul.f32 %v1283_v46, %v997_v32 }
 0x989   :  { %v1016_v50 = vadd.f32 %v1014_v48, %v987_v47  ;;  %v1015_v51 = vmul.f32 %v1013_v49, %v986_v44 }
 0x98b   :  { %1018 = vst.msk [vmem:[%s1575_s3] sm:$0xff] %vm92_vm1, %v1016_v50  ;;  %v1017_v52 = vadd.f32 %v1015_v51, %v987_v47 }
 0x98d   :  { %1019 = vst.msk [vmem:[%s1575_s3 + $0x8] sm:$0xf] %vm752_vm9, %v1017_v52 }

</bundles_post_ra>
